<compile_context>
chip_gen: v6e
topology: v6e:2x2x1
jax: 0.10.0
libtpu: 0.0.40
codegen_flags: <defaults>
</compile_context>

<pallas_src>
import functools

import jax
import jax.numpy as jnp
from jax.experimental import pallas as pl
from jax.experimental.pallas import tpu as pltpu

IN_FEATURES = 73
OUT_FEATURES = 20

# 8192-row f32 x tile lane-pads to 8192x128x4 B = 4 MiB; double-buffered
# x + out tiles total ~16 MiB -> well under the 32 MiB scoped limit we set.
MAX_BATCH_TILE = 8192
# Below this, a single full-dim block is used (launch latency dominates anyway).
MIN_TILE_FOR_SPLIT = 2048
# At least this many grid steps on large batches so megacore can split them.
MIN_GRID_STEPS = 4


def _linear_kernel(x_ref, w_ref, b_ref, o_ref):
    # x_ref: (TB, K) f32   w_ref: (K, N) f32   b_ref: (1, N) f32   o_ref: (TB, N) f32
    acc = jnp.dot(x_ref[...], w_ref[...], preferred_element_type=jnp.float32)
    o_ref[...] = acc + b_ref[...]


def _round_up(x, m):
    return ((x + m - 1) // m) * m


def _choose_batch_tile(batch):
    """Pick a sublane-aligned batch tile: big enough to amortize the ~0.35 us
    per-grid-step overhead, small enough that large batches get >=4 steps."""
    if batch <= MIN_TILE_FOR_SPLIT:
        return batch  # single full-dim block (always a legal BlockSpec)
    tb = _round_up(pl.cdiv(batch, MIN_GRID_STEPS), 8)
    return max(MIN_TILE_FOR_SPLIT, min(MAX_BATCH_TILE, tb))


@jax.jit
def liwc_forward(x, w_t, b):
    """x: (B, in_features) f32; w_t: (in_features, out_features) f32; b: (out_features,) f32."""
    B, K = x.shape
    K2, N = w_t.shape
    assert K == K2 and b.shape == (N,)

    b2 = b.reshape(1, N).astype(jnp.float32)

    tb = _choose_batch_tile(B)
    grid = (pl.cdiv(B, tb),)

    cost = pl.CostEstimate(
        flops=2 * B * K * N,
        bytes_accessed=B * K * 4 + K * N * 4 + N * 4 + B * N * 4,
        transcendentals=0,
    )

    # Note: tiny batches (B <= ~64) are pure launch/DMA latency; a caller that
    # cares could route them to a plain jnp.dot so XLA fuses across the
    # custom-call boundary. Kept in-kernel here so the demo exercises Pallas.
    return pl.pallas_call(
        _linear_kernel,
        out_shape=jax.ShapeDtypeStruct((B, N), jnp.float32),
        grid=grid,
        in_specs=[
            pl.BlockSpec((tb, K), lambda i: (i, 0)),  # x: streamed per grid step
            pl.BlockSpec((K, N), lambda i: (0, 0)),   # W^T: VMEM-resident
            pl.BlockSpec((1, N), lambda i: (0, 0)),   # bias: VMEM-resident
        ],
        out_specs=pl.BlockSpec((tb, N), lambda i: (i, 0)),
        compiler_params=pltpu.CompilerParams(
            # Batch tiles are independent -> shard across TCs on v7x; harmless
            # on single-TC v5e/v6e.
            dimension_semantics=("parallel",),
            # Explicit: double-buffered 8192-row f32 x/out tiles (~16 MiB)
            # exceed v5e's 16 MiB default scoped-VMEM limit.
            vmem_limit_bytes=32 * 1024 * 1024,
        ),
        cost_estimate=cost,
    )(x, w_t, b2)


def init_params(key, in_features=IN_FEATURES, out_features=OUT_FEATURES):
    """Deterministic init mirroring torch.nn.Linear default:
    U(-1/sqrt(in_features), 1/sqrt(in_features)) for both weight and bias."""
    k_w, k_b = jax.random.split(key)
    bound = 1.0 / jnp.sqrt(jnp.float32(in_features))
    # torch stores weight as (out, in); we keep the transposed (in, out) layout.
    w_t = jax.random.uniform(
        k_w, (in_features, out_features), jnp.float32, -bound, bound
    )
    b = jax.random.uniform(k_b, (out_features,), jnp.float32, -bound, bound)
    return w_t, b


if __name__ == "__main__":
    key = jax.random.PRNGKey(0)
    k_params, k_x_small, k_x_big = jax.random.split(key, 3)

    w_t, b = init_params(k_params)
    # Self-check hygiene only: snap weights to bf16-representable f32 values so
    # the expected result is independent of how the MXU decomposes an f32
    # matmul into bf16 passes (all products are then exact either way). The
    # kernel itself is plain f32 and does not rely on this.
    w_t = w_t.astype(jnp.bfloat16).astype(jnp.float32)

    def ref_fn(x):
        return jnp.dot(x, w_t, precision=jax.lax.Precision.HIGHEST) + b[None, :]

    # Small demo batch with integer LIWC-style count features.
    batch = 8
    x_small = jax.random.randint(
        k_x_small, (batch, IN_FEATURES), 0, 64
    ).astype(jnp.float32)
    out_small = jax.block_until_ready(liwc_forward(x_small, w_t, b))
    assert out_small.shape == (batch, OUT_FEATURES)
    assert jnp.allclose(out_small, ref_fn(x_small), atol=1e-3, rtol=1e-4)

    # Larger batch exercising the tiled / pipelined / megacore-parallel path
    # (12300 rows -> 4 grid steps of 3080 rows, last block partial & masked).
    big_batch = 12300
    x_big = jax.random.randint(
        k_x_big, (big_batch, IN_FEATURES), 0, 64
    ).astype(jnp.float32)
    out_big = jax.block_until_ready(liwc_forward(x_big, w_t, b))
    assert out_big.shape == (big_batch, OUT_FEATURES)
    assert jnp.allclose(out_big, ref_fn(x_big), atol=1e-3, rtol=1e-4)

    print("KERNEL_OK")
</pallas_src>

<mosaic_0001>
module attributes {stable_mosaic.version = 11 : i64} {
  func.func @_linear_kernel(%arg0: i32, %arg1: memref<8x73xf32, #tpu.memory_space<vmem>>, %arg2: memref<73x20xf32, #tpu.memory_space<vmem>>, %arg3: memref<1x20xf32, #tpu.memory_space<vmem>>, %arg4: memref<8x20xf32, #tpu.memory_space<vmem>>) attributes {dimension_semantics = [#tpu.dimension_semantics<parallel>], iteration_bounds = array<i64: 1>, scalar_prefetch = 0 : i64, scratch_operands = 0 : i64, tpu.core_type = #tpu.core_type<tc>, window_params = [{transform_indices = @transform_0, window_bounds = array<i64: 8, 73>}, {pipeline_mode = #tpu.pipeline_mode<synchronous>, transform_indices = @transform_1, window_bounds = array<i64: 73, 20>}, {pipeline_mode = #tpu.pipeline_mode<synchronous>, transform_indices = @transform_2, window_bounds = array<i64: 1, 20>}, {transform_indices = @transform_3, window_bounds = array<i64: 8, 20>}]} {
    %c0 = arith.constant 0 : index
    %c0_0 = arith.constant 0 : index
    %0 = vector.load %arg1[%c0, %c0_0] : memref<8x73xf32, #tpu.memory_space<vmem>>, vector<8x73xf32>
    %c0_1 = arith.constant 0 : index
    %c0_2 = arith.constant 0 : index
    %1 = vector.load %arg2[%c0_1, %c0_2] : memref<73x20xf32, #tpu.memory_space<vmem>>, vector<73x20xf32>
    %cst = arith.constant dense<0.000000e+00> : vector<8x20xf32>
    %2 = tpu.matmul %0, %1, %cst {dimension_numbers = #tpu.dot_dimension_numbers<[1], [0], [0], [1], [0, 0, 1, 1], [], []>} : vector<8x73xf32>, vector<73x20xf32>, vector<8x20xf32> -> vector<8x20xf32>
    %c0_3 = arith.constant 0 : index
    %c0_4 = arith.constant 0 : index
    %3 = vector.load %arg3[%c0_3, %c0_4] : memref<1x20xf32, #tpu.memory_space<vmem>>, vector<1x20xf32>
    %4 = vector.broadcast %3 : vector<1x20xf32> to vector<8x20xf32>
    %5 = arith.addf %2, %4 : vector<8x20xf32>
    %c0_5 = arith.constant 0 : index
    %c0_6 = arith.constant 0 : index
    %6 = vector.load %arg4[%c0_5, %c0_6] : memref<8x20xf32, #tpu.memory_space<vmem>>, vector<8x20xf32>
    tpu.vector_store %arg4[%c0_5, %c0_6], %5 {strides = array<i32>} : memref<8x20xf32, #tpu.memory_space<vmem>>, vector<8x20xf32>,
    return
  }
  func.func @transform_0(%arg0: i32) -> (i32, i32) {
    %c0_i32 = arith.constant 0 : i32
    %c0_i32_0 = arith.constant 0 : i32
    return %arg0, %c0_i32 : i32, i32
  }
  func.func @transform_1(%arg0: i32) -> (i32, i32) {
    %c0_i32 = arith.constant 0 : i32
    %c0_i32_0 = arith.constant 0 : i32
    %c0_i32_1 = arith.constant 0 : i32
    return %c0_i32, %c0_i32_0 : i32, i32
  }
  func.func @transform_2(%arg0: i32) -> (i32, i32) {
    %c0_i32 = arith.constant 0 : i32
    %c0_i32_0 = arith.constant 0 : i32
    %c0_i32_1 = arith.constant 0 : i32
    return %c0_i32, %c0_i32_0 : i32, i32
  }
  func.func @transform_3(%arg0: i32) -> (i32, i32) {
    %c0_i32 = arith.constant 0 : i32
    %c0_i32_0 = arith.constant 0 : i32
    return %arg0, %c0_i32 : i32, i32
  }
}

</mosaic_0001>

<bundles_post_ra>
// kernel: liwc_forward.1
= control target key start
LH: loop header
LB: loop body
LE: loop exit
PB: predicated region body
PF: predicated region fallthrough
CT: control target
= control target key end

     0   :  { %vm37_vm0 = vcmask 1040384   ;;  %v189_v1 = vmov 0.0   ;;  %vm190_vm1 = vmmov 0   ;;  %s251_s0 = inlined_call_operand.vmem [shape: f32[8,73], index: 0, kind: input, shape index: {}]   ;;  %s252_s1 = inlined_call_operand.vmem [shape: f32[73,20], index: 1, kind: input, shape index: {}]   ;;  %s253_s2 = inlined_call_operand.vmem [shape: f32[1,20], index: 2, kind: input, shape index: {}]   ;;  %s254_s3 = inlined_call_operand.hbm [shape: f32[8,20], index: 3, kind: output, shape index: {}]  }
   0x1   :  { %v25_v0 = vld [vmem:[%s252_s1 + $0x48] sm:$0x1]  ;;  %141 = vmatprep.subr.mxu0 %v189_v1  ;;  %v24_v2 = vld [vmem:[%s252_s1 + $0x40] sm:$0xff]  ;;  %161 = vmatprep.mubr.msk.f32.mxu0 %vm190_vm1, %v189_v1  ;;  %v23_v3 = vld [vmem:[%s252_s1 + $0x38] sm:$0xff] }
   0x2   :  { %142 = vmatpush3.msk.msra.mxu0 %vm37_vm0, %v25_v0 }
   0x3   :  { %143 = vmatprep.subr.mxu0 %v189_v1 }
   0x4   :  { %144 = vmatpush3.msra.mxu0 %v24_v2 }
   0x5   :  { %8 = vsyncpa [#allocation3], 0  ;;  %145 = vmatprep.subr.mxu0 %v189_v1  ;;  %v22_v4 = vld [vmem:[%s252_s1 + $0x30] sm:$0xff]  ;;  %v21_v5 = vld [vmem:[%s252_s1 + $0x28] sm:$0xff]  ;;  %vm33_vm2 = vcmask 596992   ;;  %s191_s9 = smov [#allocation2]  }
   0x6   :  { %146 = vmatpush3.msra.mxu0 %v23_v3  ;;  %v20_v6 = vld [vmem:[%s252_s1 + $0x20] sm:$0xff]  ;;  %v19_v7 = vld [vmem:[%s252_s1 + $0x18] sm:$0xff]  ;;  %v18_v8 = vld [vmem:[%s252_s1 + $0x10] sm:$0xff]  ;;  %s119_s10 = sshll.u32 %s191_s9, 4  ;;  %vm111_vm3 = vcmask 162816   ;;  %s120_s10 = int_to_ptr.vmem [resolvable:$true] %s119_s10 }
   0x7   :  { %147 = vmatprep.subr.mxu0 %v189_v1  ;;  %v17_v9 = vld [vmem:[%s252_s1 + $0x8] sm:$0xff]  ;;  %v16_v10 = vld [vmem:[%s252_s1] sm:$0xff]  ;;  %s167_s1 = scalar_lea.vmem %s120_s10, 128  ;;  %p172_p1 = scmp.lt.s32.totalorder %s120_s10, %s120_s10 }
   0x8   :  { %148 = vmatpush3.msra.mxu0 %v22_v4  ;;  %v15_v11 = vld [vmem:[%s251_s0] sm:$0xff]  ;;  %p168_p0 = scmp.ne.s32.totalorder %s120_s10, %s167_s1  ;;  %p173_p2 = scmp.lt.s32.totalorder %s167_s1, %s167_s1 }
   0x9   :  { %149 = vmatprep.subr.mxu0 %v189_v1  ;;  %v127_v12 = vld [vmem:[%s253_s2] ss:$0 sm:$0xff] }
   0xa   :  { %150 = vmatpush3.msra.mxu0 %v21_v5  ;;  %p174_p3 = por %p173_p2, %p172_p1 }
   0xb   :  { %151 = vmatprep.subr.mxu0 %v189_v1 }
   0xc   :  { %152 = vmatpush3.msra.mxu0 %v20_v6  ;;  %p175_p4 = pnand %p174_p3, %p168_p0 }
   0xd   :  { %153 = vmatprep.subr.mxu0 %v189_v1 }
   0xe   :  { %154 = vmatpush3.msra.mxu0 %v19_v7 }
   0xf   :  { %155 = vmatprep.subr.mxu0 %v189_v1 }
  0x10   :  { %156 = vmatpush3.msra.mxu0 %v18_v8 }
  0x11   :  { %157 = vmatprep.subr.mxu0 %v189_v1 }
  0x12   :  { %158 = vmatpush3.msra.mxu0 %v17_v9 }
  0x13   :  { %159 = vmatprep.subr.mxu0 %v189_v1 }
  0x14   :  { %160 = vmatpush3.msra.mxu0 %v16_v10 }
  0x15   :  { %162 = vmatmul.mubr.msk.f32.vlgmr.msra.gmra.mxu0 %vm33_vm2, %v15_v11 }
  0xd5   :  { %v107_v13 = vpop.f32.mrf.mxu0 }
  0xd6   :  { %v108_v14 = vadd.f32 %v127_v12, %v107_v13 }
  0xd7   :  { %v163_v15 = vpop.f32.mrf.mxu0 }
  0xd8   :  { %112 = vst.msk [vmem:[#allocation2] sm:$0xff] %vm111_vm3, %v108_v14 }
  0xd9   :  { %178 = shalt.err (!%p175_p4)
}
  0xda   :  { %122 = dma.vmem_to_hbm [thread:$0]  %s120_s10, 128, %s254_s3, [#allocation3]  }
  0xdb   :  { %187 = dma.done.wait [#allocation3], 128  }
  0xdc   :  { %188 = vsyncadd [#allocation3], 4294967168 }
  0xdd   :  { %126 = vsyncpa [#allocation3], 1 }

</bundles_post_ra>
